<compile_context>
chip_gen: v7x
topology: tpu7x:2x2x1
jax: 0.10.0
libtpu: 0.0.40
codegen_flags: <defaults>
</compile_context>

<pallas_src>
import functools

import jax
import jax.numpy as jnp
from jax.experimental import pallas as pl
from jax.experimental.pallas import tpu as pltpu


def _round_up(n, m):
    return ((n + m - 1) // m) * m


def ann_silu_kernel(x_ref, w1_ref, w2_ref, w3_ref, o_ref):
    # x_ref: (15, TB)   w1_ref: (12, 15)   w2_ref: (4, 12)   w3_ref: (1, 4)
    x = x_ref[...]
    a1 = jnp.dot(w1_ref[...], x, preferred_element_type=jnp.float32)   # (12, TB)
    h1 = a1 * jax.nn.sigmoid(a1)                                       # SiLU
    a2 = jnp.dot(w2_ref[...], h1, preferred_element_type=jnp.float32)  # (4, TB)
    h2 = a2 * jax.nn.sigmoid(a2)                                       # SiLU
    z = jnp.dot(w3_ref[...], h2, preferred_element_type=jnp.float32)   # (1, TB)
    o_ref[...] = jax.nn.sigmoid(z).astype(o_ref.dtype)                 # lane-dense store


@functools.partial(jax.jit, static_argnames=("tile_b",))
def ann_silu_forward(x, w11, w12, w13, *, tile_b=8192):
    """Pallas forward of ann_silu.  x: (B, 15); weights stored (in, out)."""
    B, d_in = x.shape
    d_h1 = w11.shape[1]   # 12
    d_h2 = w12.shape[1]   # 4
    d_out = w13.shape[1]  # 1

    # Clamp the batch tile for small B and pad B to a whole number of tiles so
    # every block is full (padding/transpose is cheap wrapper-side layout plumbing).
    tb = min(tile_b, _round_up(B, 128))
    Bp = _round_up(B, tb)

    # Batch-on-lanes layout: x -> (15, Bp); weights -> (out, in).
    x_t = x.T
    if Bp != B:
        x_t = jnp.pad(x_t, ((0, 0), (0, Bp - B)))
    w1_t, w2_t, w3_t = w11.T, w12.T, w13.T

    out_t = pl.pallas_call(
        ann_silu_kernel,
        out_shape=jax.ShapeDtypeStruct((d_out, Bp), jnp.float32),
        grid=(Bp // tb,),
        in_specs=[
            # x streams along the batch (lane) axis; Pallas double-buffers it.
            pl.BlockSpec((d_in, tb), lambda i: (0, i)),
            # Weights: constant block index -> resident in VMEM across steps.
            pl.BlockSpec((d_h1, d_in), lambda i: (0, 0)),
            pl.BlockSpec((d_h2, d_h1), lambda i: (0, 0)),
            pl.BlockSpec((d_out, d_h2), lambda i: (0, 0)),
        ],
        out_specs=pl.BlockSpec((d_out, tb), lambda i: (0, i)),
        compiler_params=pltpu.CompilerParams(
            dimension_semantics=("parallel",),
        ),
    )(x_t, w1_t, w2_t, w3_t)

    # Back to the module's (B, 1) output layout (done in the wrapper so the
    # kernel's store stays lane-dense).
    return out_t[:, :B].T


def reference_forward(x, w11, w12, w13):
    a1 = x @ w11
    h1 = a1 * jax.nn.sigmoid(a1)
    a2 = h1 @ w12
    h2 = a2 * jax.nn.sigmoid(a2)
    return jax.nn.sigmoid(h2 @ w13)


if __name__ == "__main__":
    key = jax.random.PRNGKey(0)
    kx, k1, k2, k3 = jax.random.split(key, 4)

    batch = 8
    x = jax.random.normal(kx, (batch, 15), jnp.float32)
    # Parameters match the PyTorch module: torch.randn(in, out), no biases.
    w11 = jax.random.normal(k1, (15, 12), jnp.float32)
    w12 = jax.random.normal(k2, (12, 4), jnp.float32)
    w13 = jax.random.normal(k3, (4, 1), jnp.float32)

    out = ann_silu_forward(x, w11, w12, w13)
    out = jax.block_until_ready(out)

    ref = reference_forward(x, w11, w12, w13)
    assert out.shape == (batch, 1), out.shape
    assert jnp.allclose(out, ref, atol=1e-5, rtol=1e-5), (out, ref)
    print("KERNEL_OK")
</pallas_src>

<mosaic_0001>
module attributes {stable_mosaic.version = 11 : i64} {
  func.func @ann_silu_kernel(%arg0: i32, %arg1: memref<15x128xf32, #tpu.memory_space<vmem>>, %arg2: memref<12x15xf32, #tpu.memory_space<vmem>>, %arg3: memref<4x12xf32, #tpu.memory_space<vmem>>, %arg4: memref<1x4xf32, #tpu.memory_space<vmem>>, %arg5: memref<1x128xf32, #tpu.memory_space<vmem>>) attributes {dimension_semantics = [#tpu.dimension_semantics<parallel>], iteration_bounds = array<i64: 1>, scalar_prefetch = 0 : i64, scratch_operands = 0 : i64, tpu.core_type = #tpu.core_type<tc>, window_params = [{transform_indices = @transform_0, window_bounds = array<i64: 15, 128>}, {pipeline_mode = #tpu.pipeline_mode<synchronous>, transform_indices = @transform_1, window_bounds = array<i64: 12, 15>}, {pipeline_mode = #tpu.pipeline_mode<synchronous>, transform_indices = @transform_2, window_bounds = array<i64: 4, 12>}, {pipeline_mode = #tpu.pipeline_mode<synchronous>, transform_indices = @transform_3, window_bounds = array<i64: 1, 4>}, {transform_indices = @transform_4, window_bounds = array<i64: 1, 128>}]} {
    %c0 = arith.constant 0 : index
    %c0_0 = arith.constant 0 : index
    %0 = vector.load %arg1[%c0, %c0_0] : memref<15x128xf32, #tpu.memory_space<vmem>>, vector<15x128xf32>
    %c0_1 = arith.constant 0 : index
    %c0_2 = arith.constant 0 : index
    %1 = vector.load %arg2[%c0_1, %c0_2] : memref<12x15xf32, #tpu.memory_space<vmem>>, vector<12x15xf32>
    %cst = arith.constant dense<0.000000e+00> : vector<12x128xf32>
    %2 = tpu.matmul %1, %0, %cst {dimension_numbers = #tpu.dot_dimension_numbers<[1], [0], [0], [1], [0, 0, 1, 1], [], []>} : vector<12x15xf32>, vector<15x128xf32>, vector<12x128xf32> -> vector<12x128xf32>
    %3 = arith.negf %2 : vector<12x128xf32>
    %4 = math.exp %3 : vector<12x128xf32>
    %cst_3 = arith.constant 1.000000e+00 : f32
    %5 = vector.broadcast %cst_3 : f32 to vector<12x128xf32>
    %6 = arith.addf %5, %4 : vector<12x128xf32>
    %7 = arith.divf %5, %6 : vector<12x128xf32>
    %8 = arith.mulf %2, %7 : vector<12x128xf32>
    %c0_4 = arith.constant 0 : index
    %c0_5 = arith.constant 0 : index
    %9 = vector.load %arg3[%c0_4, %c0_5] : memref<4x12xf32, #tpu.memory_space<vmem>>, vector<4x12xf32>
    %cst_6 = arith.constant dense<0.000000e+00> : vector<4x128xf32>
    %10 = tpu.matmul %9, %8, %cst_6 {dimension_numbers = #tpu.dot_dimension_numbers<[1], [0], [0], [1], [0, 0, 1, 1], [], []>} : vector<4x12xf32>, vector<12x128xf32>, vector<4x128xf32> -> vector<4x128xf32>
    %11 = arith.negf %10 : vector<4x128xf32>
    %12 = math.exp %11 : vector<4x128xf32>
    %cst_7 = arith.constant 1.000000e+00 : f32
    %13 = vector.broadcast %cst_7 : f32 to vector<4x128xf32>
    %14 = arith.addf %13, %12 : vector<4x128xf32>
    %15 = arith.divf %13, %14 : vector<4x128xf32>
    %16 = arith.mulf %10, %15 : vector<4x128xf32>
    %c0_8 = arith.constant 0 : index
    %c0_9 = arith.constant 0 : index
    %17 = vector.load %arg4[%c0_8, %c0_9] : memref<1x4xf32, #tpu.memory_space<vmem>>, vector<1x4xf32>
    %cst_10 = arith.constant dense<0.000000e+00> : vector<1x128xf32>
    %18 = tpu.matmul %17, %16, %cst_10 {dimension_numbers = #tpu.dot_dimension_numbers<[1], [0], [0], [1], [0, 0, 1, 1], [], []>} : vector<1x4xf32>, vector<4x128xf32>, vector<1x128xf32> -> vector<1x128xf32>
    %19 = arith.negf %18 : vector<1x128xf32>
    %20 = math.exp %19 : vector<1x128xf32>
    %cst_11 = arith.constant 1.000000e+00 : f32
    %21 = vector.broadcast %cst_11 : f32 to vector<1x128xf32>
    %22 = arith.addf %21, %20 : vector<1x128xf32>
    %23 = arith.divf %21, %22 : vector<1x128xf32>
    %c0_12 = arith.constant 0 : index
    %c0_13 = arith.constant 0 : index
    %24 = vector.load %arg5[%c0_12, %c0_13] : memref<1x128xf32, #tpu.memory_space<vmem>>, vector<1x128xf32>
    tpu.vector_store %arg5[%c0_12, %c0_13], %23 {strides = array<i32>} : memref<1x128xf32, #tpu.memory_space<vmem>>, vector<1x128xf32>,
    return
  }
  func.func @transform_0(%arg0: i32) -> (i32, i32) {
    %c0_i32 = arith.constant 0 : i32
    %c0_i32_0 = arith.constant 0 : i32
    return %c0_i32, %arg0 : i32, i32
  }
  func.func @transform_1(%arg0: i32) -> (i32, i32) {
    %c0_i32 = arith.constant 0 : i32
    %c0_i32_0 = arith.constant 0 : i32
    %c0_i32_1 = arith.constant 0 : i32
    return %c0_i32, %c0_i32_0 : i32, i32
  }
  func.func @transform_2(%arg0: i32) -> (i32, i32) {
    %c0_i32 = arith.constant 0 : i32
    %c0_i32_0 = arith.constant 0 : i32
    %c0_i32_1 = arith.constant 0 : i32
    return %c0_i32, %c0_i32_0 : i32, i32
  }
  func.func @transform_3(%arg0: i32) -> (i32, i32) {
    %c0_i32 = arith.constant 0 : i32
    %c0_i32_0 = arith.constant 0 : i32
    %c0_i32_1 = arith.constant 0 : i32
    return %c0_i32, %c0_i32_0 : i32, i32
  }
  func.func @transform_4(%arg0: i32) -> (i32, i32) {
    %c0_i32 = arith.constant 0 : i32
    %c0_i32_0 = arith.constant 0 : i32
    return %c0_i32, %arg0 : i32, i32
  }
}

</mosaic_0001>

<bundles_post_ra>
// kernel: ann_silu_forward.1
= control target key start
LH: loop header
LB: loop body
LE: loop exit
PB: predicated region body
PF: predicated region fallthrough
CT: control target
= control target key end

     0   :  { %vm28_vm0 = vcmask 1046528   ;;  %vm21_vm1 = vcmask 121856   ;;  %vm365_vm2 = vmmov 1   ;;  %v366_v5 = vmov 0.0|0.0   ;;  %s419_s0 = inlined_call_operand.vmem [shape: f32[15,128], index: 0, kind: input, shape index: {}]   ;;  %s420_s1 = inlined_call_operand.vmem [shape: f32[12,15], index: 1, kind: input, shape index: {}]   ;;  %s421_s2 = inlined_call_operand.vmem [shape: f32[4,12], index: 2, kind: input, shape index: {}]   ;;  %s422_s3 = inlined_call_operand.vmem [shape: f32[1,4], index: 3, kind: input, shape index: {}]   ;;  %s423_s4 = inlined_call_operand.vmem [shape: f32[1,128], index: 4, kind: output, shape index: {}]  }
   0x1   :  { %v17_v0 = vld [vmem:[%s419_s0] sm:$0xff]  ;;  %v18_v1 = vld [vmem:[%s419_s0 + $0x8] sm:$0x7f]  ;;  %vm336_vm3 = vmpackc.low %vm28_vm0, %vm365_vm2  ;;  %341 = vmatprep.subr.bf16.mxu1 %v366_v5  ;;  %vm367_vm4 = vmmov 0   ;;  %v368_v6 = vmov 0.0   ;;  %vm126_vm5 = vcmask 1043456  }
   0x2   :  { %v335_v2 = vpack.c.bf16 %v18_v1, %v17_v0  ;;  %v19_v3 = vld [vmem:[%s420_s1] sm:$0xff]  ;;  %v20_v4 = vld [vmem:[%s420_s1 + $0x8] sm:$0xf]  ;;  %327 = vmatprep.mubr.msk.f32.mxu1 %vm367_vm4, %v368_v6  ;;  %vm343_vm6 = vmpackc.low %vm126_vm5, %vm365_vm2  ;;  %vm122_vm7 = vcmask 97280   ;;  %vm208_vm8 = vcmask 31744  }
   0x3   :  { %320 = vmatprep.mubr.msk.f32.mxu0 %vm21_vm1, %v19_v3  ;;  %v121_v20 = vld [vmem:[%s421_s2] sm:$0xf] }
   0x4   :  { %337 = vmatprep.subr.msk.bf16.mxu0 %vm336_vm3, %v335_v2  ;;  %v207_v28 = vld [vmem:[%s422_s3] sm:$0x1] }
   0x5   :  { %340 = vmatpush3.bf16.msk.msra.mxu0 %vm336_vm3, %v335_v2 }
   0x6   :  { %330 = vmatprep.subr.mxu0 %v368_v6 }
   0x8   :  { %321 = vmatmul.mubr.msk.f32.vlgmr.msra.gmra.mrb[0].mxu0 %vm21_vm1, %v20_v4 }
   0x9   :  { %332 = vmatprep.mubr.msk.f32.mxu0 %vm367_vm4, %v368_v6 }
  0xdb   :  { %v322_v7 = vpop.f32.mrb[0].mxu0 }
  0xdc   :  { %v300_v8 = vmul.f32 -1.442695, %v322_v7  ;;  %v98_v9 = vpop.f32.mrb[1].mxu0 }
  0xdd   :  { %v299_v10 = vmul.f32 -1.442695, %v98_v9 }
  0xde   :  { %349 = vpow2.f32 %v300_v8 }
  0xdf   :  { %351 = vpow2.f32 %v299_v10 }
  0xe8   :  { %v350_v11 = vpop.eup %349 }
  0xe9   :  { %v352_v12 = vpop.eup %351  ;;  %v114_v13 = vadd.f32 1.0, %v350_v11 }
  0xea   :  { %v113_v14 = vadd.f32 1.0, %v352_v12 }
  0xeb   :  { %353 = vrcp.f32 %v114_v13 }
  0xec   :  { %355 = vrcp.f32 %v113_v14 }
  0xf5   :  { %v354_v15 = vpop.eup %353 }
  0xf6   :  { %v356_v16 = vpop.eup %355  ;;  %v120_v17 = vmul.f32 %v354_v15, %v322_v7 }
  0xf7   :  { %v119_v18 = vmul.f32 %v356_v16, %v98_v9 }
  0xf9   :  { %v342_v19 = vpack.c.bf16 %v120_v17, %v119_v18 }
  0xfb   :  { %344 = vmatpush3.bf16.msk.msra.mxu1 %vm343_vm6, %v342_v19 }
  0xfe   :  { %328 = vmatmul.mubr.msk.f32.vlgmr.msra.gmra.mrb[0].mxu1 %vm122_vm7, %v121_v20 }
 0x1d1   :  { %v196_v21 = vpop.f32.mrb[0].mxu1 }
 0x1d2   :  { %v303_v22 = vmul.f32 -1.442695, %v196_v21  ;;  %v329_v23 = vpop.f32.mrb[1].mxu1 }
 0x1d4   :  { %357 = vpow2.f32 %v303_v22 }
 0x1de   :  { %v358_v24 = vpop.eup %357 }
 0x1df   :  { %v203_v25 = vadd.f32 1.0, %v358_v24 }
 0x1e1   :  { %359 = vrcp.f32 %v203_v25 }
 0x1eb   :  { %v360_v26 = vpop.eup %359 }
 0x1ec   :  { %v206_v27 = vmul.f32 %v360_v26, %v196_v21 }
 0x1ee   :  { %331 = vmatpush3.msk.msra.mxu0 %vm126_vm5, %v206_v27 }
 0x1ef   :  { %333 = vmatmul.mubr.msk.f32.vlgmr.msra.gmra.mrb[2].mxu0 %vm208_vm8, %v207_v28 }
 0x2c2   :  { %v281_v29 = vpop.f32.mrb[2].mxu0 }
 0x2c3   :  { %v306_v30 = vmul.f32 -1.442695, %v281_v29  ;;  %v334_v31 = vpop.f32.mrb[3].mxu0 }
 0x2c5   :  { %361 = vpow2.f32 %v306_v30 }
 0x2cf   :  { %v362_v32 = vpop.eup %361 }
 0x2d0   :  { %v288_v33 = vadd.f32 1.0, %v362_v32 }
 0x2d2   :  { %363 = vrcp.f32 %v288_v33 }
 0x2dc   :  { %v364_v34 = vpop.eup %363 }
 0x2dd   :  { %291 = vst [vmem:[%s423_s4] sm:$0x1] %v364_v34 }

</bundles_post_ra>
